<compile_context>
chip_gen: v6e
topology: v6e:2x2x1
jax: 0.10.0
libtpu: 0.0.40
codegen_flags: <defaults>
</compile_context>

<pallas_src>
import jax
import jax.numpy as jnp
from jax.experimental import pallas as pl
from jax.experimental.pallas import tpu as pltpu


# ------------------------------ kernels -------------------------------------


def _matmul_kernel_accum_out(x_ref, w_ref, o_ref):
    # x_ref: (tile_b, tile_k), w_ref: (tile_k, tile_n), o_ref: (tile_b, tile_n) f32
    # o_ref's index_map ignores the K grid axis -> it is resident across K and
    # doubles as the accumulator (no scratch, no final copy/cast).
    @pl.when(pl.program_id(2) == 0)
    def _init():
        o_ref[...] = jnp.zeros_like(o_ref)

    o_ref[...] += jnp.dot(
        x_ref[...], w_ref[...], preferred_element_type=jnp.float32
    )


def _matmul_kernel_scratch(x_ref, w_ref, o_ref, acc_ref):
    # Same contraction, but with an explicit f32 accumulator for non-f32 outputs.
    @pl.when(pl.program_id(2) == 0)
    def _init():
        acc_ref[...] = jnp.zeros_like(acc_ref)

    acc_ref[...] += jnp.dot(
        x_ref[...], w_ref[...], preferred_element_type=jnp.float32
    )

    @pl.when(pl.program_id(2) == pl.num_programs(2) - 1)
    def _store():
        o_ref[...] = acc_ref[...].astype(o_ref.dtype)


# ------------------------------ helpers -------------------------------------


def _tpu_vmem_capacity_bytes():
    try:
        return int(pltpu.get_tpu_info().vmem_capacity_bytes)
    except Exception:
        # Conservative fallback (v7x per-TensorCore VMEM).
        return 64 << 20


def _round_up(x, m):
    return ((x + m - 1) // m) * m


def _clamp_tile(tile, dim, align):
    """Clamp a tile to `dim`; prefer an `align`-multiple block for mid-size dims."""
    if tile >= dim:
        if dim > align and dim % align != 0:
            return (dim // align) * align   # cdiv handles the remainder tile
        return dim                          # full dim is always layout-legal
    return tile


# ------------------------------ wrapper -------------------------------------


def embedding_forward(x, weight, *, compute_dtype=None,
                      tile_b=None, tile_n=None, tile_k=None):
    """y = x @ weight.T ; weight in PyTorch layout (c_embed, c_inputs)."""
    batch, c_inputs = x.shape
    c_embed, k_dim = weight.shape
    assert k_dim == c_inputs, "weight must be (c_embed, c_inputs)"

    out_dtype = x.dtype

    # ---- generation-aware defaults --------------------------------------
    vmem_cap = _tpu_vmem_capacity_bytes()
    if vmem_cap >= (100 << 20):          # v5e / v6e: 128 MiB per TC
        d_tb, d_tn, d_tk = 512, 1024, 512
    else:                                # v7x: 64 MiB per TC, 3.2 TB/s HBM
        d_tb, d_tn, d_tk = 256, 512, 512
    tile_b = d_tb if tile_b is None else tile_b
    tile_n = d_tn if tile_n is None else tile_n
    tile_k = d_tk if tile_k is None else tile_k
    vmem_cap_limit = int(0.8 * vmem_cap)  # leave headroom for compiler scratch

    # ---- lane-dense output: pad c_embed up to a multiple of 128 ----------
    n_out = _round_up(c_embed, 128)

    # ---- pre-transpose the (static) weight once: (c_inputs, n_out) -------
    w_t = weight.T
    if n_out != c_embed:
        w_t = jnp.pad(w_t, ((0, 0), (0, n_out - c_embed)))

    x_in = x
    if compute_dtype is not None:
        x_in = x_in.astype(compute_dtype)
        w_t = w_t.astype(compute_dtype)

    # ---- tile clamping / alignment ---------------------------------------
    tile_b = min(tile_b, batch)                 # full batch is layout-legal
    tile_n = _clamp_tile(tile_n, n_out, 256)    # keep MXU passes full on v6e/v7x
    tile_k = _clamp_tile(tile_k, c_inputs, 256)

    # Megacore (v7x has 2 TCs): make sure at least one parallel axis has >1 tile.
    if pl.cdiv(batch, tile_b) == 1 and pl.cdiv(n_out, tile_n) == 1:
        if n_out >= 256:
            tile_n = max(128, ((n_out // 2) // 128) * 128)
        elif batch >= 16:
            tile_b = max(8, ((batch // 2) // 8) * 8)

    grid = (
        pl.cdiv(batch, tile_b),     # B tiles  (parallel)
        pl.cdiv(n_out, tile_n),     # N tiles  (parallel)
        pl.cdiv(c_inputs, tile_k),  # K tiles  (reduction, last / arbitrary)
    )

    # ---- kernel / scratch selection --------------------------------------
    use_scratch = jnp.dtype(out_dtype) != jnp.dtype(jnp.float32)
    if use_scratch:
        kernel = _matmul_kernel_scratch
        scratch_shapes = [pltpu.VMEM((tile_b, tile_n), jnp.float32)]
    else:
        kernel = _matmul_kernel_accum_out
        scratch_shapes = []

    # Triple-buffer the dominant (weight) stream only when the K loop is deep
    # enough for its DMA to be hidden behind two compute steps.
    w_spec_kwargs = {}
    w_bufs = 2
    if grid[2] >= 3:
        w_spec_kwargs["pipeline_mode"] = pl.Buffered(3)
        w_bufs = 3

    # ---- cost estimate & VMEM budget --------------------------------------
    x_item = jnp.dtype(x_in.dtype).itemsize
    w_item = jnp.dtype(w_t.dtype).itemsize
    o_item = jnp.dtype(out_dtype).itemsize

    cost = pl.CostEstimate(
        flops=2 * batch * c_inputs * n_out,
        transcendentals=0,
        bytes_accessed=(
            batch * c_inputs * x_item * grid[1]     # x re-read per N tile
            + c_inputs * n_out * w_item * grid[0]   # weight re-read per B tile
            + batch * n_out * o_item                # output written once
        ),
    )

    vmem_need = (
        2 * tile_b * tile_k * x_item
        + w_bufs * tile_k * tile_n * w_item
        + 2 * tile_b * tile_n * o_item
        + (tile_b * tile_n * 4 if use_scratch else 0)
    )
    vmem_limit = int(min(max(2 * vmem_need, 32 << 20), vmem_cap_limit))

    out = pl.pallas_call(
        kernel,
        out_shape=jax.ShapeDtypeStruct((batch, n_out), out_dtype),
        grid_spec=pltpu.PrefetchScalarGridSpec(
            num_scalar_prefetch=0,
            grid=grid,
            in_specs=[
                pl.BlockSpec((tile_b, tile_k), lambda i, j, k: (i, k)),
                pl.BlockSpec((tile_k, tile_n), lambda i, j, k: (k, j),
                             **w_spec_kwargs),
            ],
            out_specs=pl.BlockSpec((tile_b, tile_n), lambda i, j, k: (i, j)),
            scratch_shapes=scratch_shapes,
        ),
        compiler_params=pltpu.CompilerParams(
            dimension_semantics=("parallel", "parallel", "arbitrary"),
            vmem_limit_bytes=vmem_limit,
        ),
        cost_estimate=cost,
    )(x_in, w_t)

    if n_out != c_embed:
        out = out[:, :c_embed]
    return out


# ------------------------------ test ----------------------------------------


if __name__ == "__main__":
    # Small shapes consistent with the module: batch=8, c_inputs=32, c_embed=64
    batch, c_inputs, c_embed = 8, 32, 64

    key = jax.random.PRNGKey(0)
    kx, kw = jax.random.split(key)

    # nn.Linear default init: U(-1/sqrt(fan_in), 1/sqrt(fan_in))
    x = jax.random.normal(kx, (batch, c_inputs), dtype=jnp.float32)
    bound = 1.0 / (c_inputs ** 0.5)
    weight = jax.random.uniform(
        kw, (c_embed, c_inputs), minval=-bound, maxval=bound, dtype=jnp.float32
    )

    y_ref = x @ weight.T

    # Full-precision path (exact vs. f32 reference).
    y = jax.block_until_ready(embedding_forward(x, weight))
    assert y.shape == (batch, c_embed)
    assert jnp.allclose(y, y_ref, atol=1e-5, rtol=1e-5)

    # bf16 MXU path (f32 accumulation) — the recommended config for large tables.
    y_bf16 = jax.block_until_ready(
        embedding_forward(x, weight, compute_dtype=jnp.bfloat16)
    )
    assert y_bf16.shape == (batch, c_embed)
    assert jnp.allclose(y_bf16, y_ref, atol=2e-2, rtol=2e-2)

    print("KERNEL_OK")
</pallas_src>

<mosaic_0001>
module attributes {stable_mosaic.version = 11 : i64} {
  func.func @_matmul_kernel_accum_out(%arg0: i32, %arg1: i32, %arg2: i32, %arg3: memref<8x32xf32, #tpu.memory_space<vmem>>, %arg4: memref<32x128xf32, #tpu.memory_space<vmem>>, %arg5: memref<8x128xf32, #tpu.memory_space<vmem>>) attributes {dimension_semantics = [#tpu.dimension_semantics<parallel>, #tpu.dimension_semantics<parallel>, #tpu.dimension_semantics<arbitrary>], iteration_bounds = array<i64: 1, 1, 1>, scalar_prefetch = 0 : i64, scratch_operands = 0 : i64, tpu.core_type = #tpu.core_type<tc>, window_params = [{transform_indices = @transform_0, window_bounds = array<i64: 8, 32>}, {transform_indices = @transform_1, window_bounds = array<i64: 32, 128>}, {transform_indices = @transform_2, window_bounds = array<i64: 8, 128>}]} {
    %c0_i32 = arith.constant 0 : i32
    %0 = arith.cmpi eq, %arg2, %c0_i32 : i32
    %1 = arith.extui %0 : i1 to i32
    %c0_i32_0 = arith.constant 0 : i32
    %2 = arith.cmpi ne, %1, %c0_i32_0 : i32
    scf.if %2 {
      %cst_8 = arith.constant 0.000000e+00 : f32
      %9 = vector.broadcast %cst_8 : f32 to vector<8x128xf32>
      %c0_9 = arith.constant 0 : index
      %c0_10 = arith.constant 0 : index
      %10 = vector.load %arg5[%c0_9, %c0_10] : memref<8x128xf32, #tpu.memory_space<vmem>>, vector<8x128xf32>
      tpu.vector_store %arg5[%c0_9, %c0_10], %9 {strides = array<i32>} : memref<8x128xf32, #tpu.memory_space<vmem>>, vector<8x128xf32>,
    } else {
    }
    %c0 = arith.constant 0 : index
    %c0_1 = arith.constant 0 : index
    %3 = vector.load %arg5[%c0, %c0_1] : memref<8x128xf32, #tpu.memory_space<vmem>>, vector<8x128xf32>
    %c0_2 = arith.constant 0 : index
    %c0_3 = arith.constant 0 : index
    %4 = vector.load %arg3[%c0_2, %c0_3] : memref<8x32xf32, #tpu.memory_space<vmem>>, vector<8x32xf32>
    %c0_4 = arith.constant 0 : index
    %c0_5 = arith.constant 0 : index
    %5 = vector.load %arg4[%c0_4, %c0_5] : memref<32x128xf32, #tpu.memory_space<vmem>>, vector<32x128xf32>
    %cst = arith.constant dense<0.000000e+00> : vector<8x128xf32>
    %6 = tpu.matmul %4, %5, %cst {dimension_numbers = #tpu.dot_dimension_numbers<[1], [0], [0], [1], [0, 0, 1, 1], [], []>} : vector<8x32xf32>, vector<32x128xf32>, vector<8x128xf32> -> vector<8x128xf32>
    %7 = arith.addf %3, %6 : vector<8x128xf32>
    %c0_6 = arith.constant 0 : index
    %c0_7 = arith.constant 0 : index
    %8 = vector.load %arg5[%c0_6, %c0_7] : memref<8x128xf32, #tpu.memory_space<vmem>>, vector<8x128xf32>
    tpu.vector_store %arg5[%c0_6, %c0_7], %7 {strides = array<i32>} : memref<8x128xf32, #tpu.memory_space<vmem>>, vector<8x128xf32>,
    return
  }
  func.func @transform_0(%arg0: i32, %arg1: i32, %arg2: i32) -> (i32, i32) {
    %c0_i32 = arith.constant 0 : i32
    return %arg0, %arg2 : i32, i32
  }
  func.func @transform_1(%arg0: i32, %arg1: i32, %arg2: i32) -> (i32, i32) {
    %c0_i32 = arith.constant 0 : i32
    return %arg2, %arg1 : i32, i32
  }
  func.func @transform_2(%arg0: i32, %arg1: i32, %arg2: i32) -> (i32, i32) {
    %c0_i32 = arith.constant 0 : i32
    return %arg0, %arg1 : i32, i32
  }
}

</mosaic_0001>

<bundles_post_ra>
// kernel: tpu_custom_call.1
= control target key start
LH: loop header
LB: loop body
LE: loop exit
PB: predicated region body
PF: predicated region fallthrough
CT: control target
= control target key end

     0   :  { %7 = vsyncpa [#allocation3], 0  ;;  %s262_s0 = inlined_call_operand.hbm [shape: f32[8,32], index: 0, kind: input, shape index: {}]   ;;  %s263_s1 = inlined_call_operand.hbm [shape: f32[32,128], index: 1, kind: input, shape index: {}]   ;;  %s264_s2 = inlined_call_operand.hbm [shape: f32[8,128], index: 2, kind: output, shape index: {}]  }
   0x1   :  { %8 = vsyncpa [#allocation6], 0 }
   0x2   :  { %9 = vsyncpa [#allocation4], 0  ;;  %s231_s9 = smov [#allocation2]   ;;  %s232_s11 = smov [#allocation5]  }
   0x3   :  { %s16_s10 = sshll.u32 %s231_s9, 4  ;;  %s25_s12 = sshll.u32 %s232_s11, 4  ;;  %s17_s10 = int_to_ptr.vmem [resolvable:$true] %s16_s10  ;;  %s26_s12 = int_to_ptr.vmem [resolvable:$true] %s25_s12 }
   0x4   :  { %s173_s13 = scalar_lea.vmem %s17_s10, 128  ;;  %p178_p1 = scmp.lt.s32.totalorder %s17_s10, %s17_s10 }
   0x5   :  { %p174_p0 = scmp.ne.s32.totalorder %s17_s10, %s173_s13  ;;  %p179_p2 = scmp.lt.s32.totalorder %s173_s13, %s173_s13 }
   0x7   :  { %p180_p3 = por %p179_p2, %p178_p1 }
   0x9   :  { %p181_p4 = pnand %p180_p3, %p174_p0 }
   0xb   :  { %184 = shalt.err (!%p181_p4)
}
   0xc   :  { %19 = dma.hbm_to_vmem [thread:$0]  %s262_s0, 128, %s17_s10, [#allocation3]  }
   0xd   :  { %s193_s16 = scalar_lea.vmem %s26_s12, 512  ;;  %p198_p6 = scmp.lt.s32.totalorder %s26_s12, %s26_s12 }
   0xe   :  { %p194_p5 = scmp.ne.s32.totalorder %s26_s12, %s193_s16  ;;  %p199_p7 = scmp.lt.s32.totalorder %s193_s16, %s193_s16 }
  0x10   :  { %p200_p8 = por %p199_p7, %p198_p6 }
  0x12   :  { %p201_p9 = pnand %p200_p8, %p194_p5 }
  0x14   :  { %204 = shalt.err (!%p201_p9)
}
  0x15   :  { %s233_s17 = smov 128   ;;  %s234_s18 = smov 8  }
  0x16   :  { %31 = dma.hbm_to_vmem [thread:$0]  %s263_s1, 512, %s26_s12, [#allocation6], %s233_s17, %s233_s17, %s234_s18  }
  0x17   :  { %225 = dma.done.wait [#allocation3], 128  }
  0x18   :  { %226 = vsyncadd [#allocation3], 4294967168 }
  0x19   :  { %227 = dma.done.wait [#allocation6], 512  }
  0x1a   :  { %228 = vsyncadd [#allocation6], 4294966784  ;;  %v235_v0 = vmov 0.0   ;;  %vm236_vm0 = vmmov 0   ;;  %v48_v1 = vld [vmem:[#allocation5 + $0x18] sm:$0xff]  ;;  %v47_v2 = vld [vmem:[#allocation5 + $0x10] sm:$0xff] }
  0x1b   :  { %147 = vmatprep.subr.mxu0 %v235_v0  ;;  %155 = vmatprep.mubr.msk.f32.mxu0 %vm236_vm0, %v235_v0  ;;  %v46_v3 = vld [vmem:[#allocation5 + $0x8] sm:$0xff]  ;;  %v45_v4 = vld [vmem:[#allocation5] sm:$0xff]  ;;  %v44_v5 = vld [vmem:[#allocation2] sm:$0xff]  ;;  %vm49_vm1 = vcmask 261120   ;;  %s237_s0 = smov [#allocation7]  }
  0x1c   :  { %148 = vmatpush3.msra.mxu0 %v48_v1  ;;  %s131_s1 = sshll.u32 %s237_s0, 4  ;;  %s132_s1 = int_to_ptr.vmem [resolvable:$true] %s131_s1 }
  0x1d   :  { %149 = vmatprep.subr.mxu0 %v235_v0  ;;  %s205_s21 = scalar_lea.vmem %s132_s1, 128  ;;  %p210_p11 = scmp.lt.s32.totalorder %s132_s1, %s132_s1 }
  0x1e   :  { %150 = vmatpush3.msra.mxu0 %v47_v2  ;;  %p206_p10 = scmp.ne.s32.totalorder %s132_s1, %s205_s21  ;;  %p211_p12 = scmp.lt.s32.totalorder %s205_s21, %s205_s21 }
  0x1f   :  { %151 = vmatprep.subr.mxu0 %v235_v0 }
  0x20   :  { %152 = vmatpush3.msra.mxu0 %v46_v3  ;;  %p212_p13 = por %p211_p12, %p210_p11 }
  0x21   :  { %153 = vmatprep.subr.mxu0 %v235_v0 }
  0x22   :  { %154 = vmatpush3.msra.mxu0 %v45_v4  ;;  %p213_p0 = pnand %p212_p13, %p206_p10 }
  0x23   :  { %156 = vmatmul.mubr.msk.f32.vlgmr.msra.gmra.mxu0 %vm49_vm1, %v44_v5 }
  0xe3   :  { %v119_v6 = vpop.f32.mrf.mxu0 }
  0xe4   :  { %124 = vst [vmem:[#allocation7] sm:$0xff] %v119_v6 }
  0xe5   :  { %v157_v7 = vpop.f32.mrf.mxu0 }
  0xe6   :  { %216 = shalt.err (!%p213_p0)
}
  0xe7   :  { %134 = dma.vmem_to_hbm [thread:$0]  %s132_s1, 128, %s264_s2, [#allocation4]  }
  0xe8   :  { %229 = dma.done.wait [#allocation4], 128  }
  0xe9   :  { %230 = vsyncadd [#allocation4], 4294967168 }
  0xea   :  { %138 = vsyncpa [#allocation3], 1 }
  0xeb   :  { %139 = vsyncpa [#allocation6], 1 }
  0xec   :  { %140 = vsyncpa [#allocation4], 1 }

</bundles_post_ra>
